<compile_context>
chip_gen: v5e
topology: v5e:2x2
jax: 0.10.0
libtpu: 0.0.40
codegen_flags: <defaults>
</compile_context>

<pallas_src>
import jax
import jax.numpy as jnp
from jax import lax
from jax.experimental import pallas as pl
from jax.experimental.pallas import tpu as pltpu


def _lrelu(v):
    return jnp.where(v >= 0, v, 0.3 * v)


def _make_kernel(*, first, downsample, block_n, L, L3, C_in, C_out):
    def kernel(*args):
        it = iter(args)
        x_ref = next(it)                       # (block_n, L, C_in) f32
        w1_ref = next(it)                      # (3, C_in, C_out)  bf16
        b1_ref = next(it)                      # (1, C_out)        f32
        w2_ref = next(it)                      # (3, C_out, C_out) bf16
        b2_ref = next(it)                      # (1, C_out)        f32
        if downsample:
            wd_ref = next(it)                  # (C_in, C_out)     bf16
            bd_ref = next(it)                  # (1, C_out)        f32
        if not first:
            bn1s_ref = next(it)                # (1, C_in)         f32
            bn1b_ref = next(it)                # (1, C_in)         f32
        bn2s_ref = next(it)                    # (1, C_out)        f32
        bn2b_ref = next(it)                    # (1, C_out)        f32
        o_ref = next(it)                       # (block_n, L3, C_out) f32
        pad1 = next(it)                        # (L + 2, C_in)  f32 scratch
        pad2 = next(it)                        # (L + 2, C_out) f32 scratch
        spool = next(it)                       # (L, C_out)     f32 scratch

        # Hoist all constant reads out of the per-batch loop.
        w1_0, w1_1, w1_2 = w1_ref[0], w1_ref[1], w1_ref[2]
        w2_0, w2_1, w2_2 = w2_ref[0], w2_ref[1], w2_ref[2]
        b1 = b1_ref[...]
        b2 = b2_ref[...]
        bn2s = bn2s_ref[...]
        bn2b = bn2b_ref[...]
        if downsample:
            wd = wd_ref[...]
            bd = bd_ref[...]
        if not first:
            bn1s = bn1s_ref[...]
            bn1b = bn1b_ref[...]

        # Zero the padded scratches once per grid step; only rows 0 and L+1 must
        # stay zero (Conv1d padding=1), interior rows are rewritten per batch.
        pad1[...] = jnp.zeros((L + 2, C_in), jnp.float32)
        pad2[...] = jnp.zeros((L + 2, C_out), jnp.float32)

        def conv3(h, scr, t0, t1, t2, bias):
            # Conv1d(kernel=3, padding=1, stride=1):
            #   y[t] = w0 . x[t-1] + w1 . x[t] + w2 . x[t+1]   (zero at t=-1, t=L)
            scr[1:L + 1, :] = h
            prev = scr[0:L, :]
            nxt = scr[2:L + 2, :]
            y = (jnp.dot(prev.astype(jnp.bfloat16), t0,
                         preferred_element_type=jnp.float32)
                 + jnp.dot(h.astype(jnp.bfloat16), t1,
                           preferred_element_type=jnp.float32)
                 + jnp.dot(nxt.astype(jnp.bfloat16), t2,
                           preferred_element_type=jnp.float32))
            return y + bias

        for b in range(block_n):
            xb = x_ref[b]                                    # (L, C_in) f32
            if not first:
                h = _lrelu(xb * bn1s + bn1b)
            else:
                h = xb

            y = conv3(h, pad1, w1_0, w1_1, w1_2, b1)         # (L, C_out)
            z = _lrelu(y * bn2s + bn2b)
            y2 = conv3(z, pad2, w2_0, w2_1, w2_2, b2)        # (L, C_out)

            if downsample:
                ident = jnp.dot(xb.astype(jnp.bfloat16), wd,
                                preferred_element_type=jnp.float32) + bd
            else:
                ident = xb                                   # requires C_in == C_out

            s = y2 + ident                                   # (L, C_out) f32

            # MaxPool1d(3): three stride-3 sublane slices + elementwise max.
            spool[...] = s
            p0 = spool[pl.ds(0, L3, stride=3), :]
            p1 = spool[pl.ds(1, L3, stride=3), :]
            p2 = spool[pl.ds(2, L3, stride=3), :]
            o_ref[b] = jnp.maximum(jnp.maximum(p0, p1), p2)

    return kernel


def residual_block_forward(x_ncl, params, *, first: bool, downsample: bool,
                           block_n: int | None = None):
    """Pallas forward.  x_ncl: (N, C_in, L) float32.  Returns (N, C_out, L // 3)."""
    N, C_in, L = x_ncl.shape
    C_out = params["w1"].shape[0]
    assert L % 3 == 0, "MaxPool1d(3) assumes L divisible by 3"
    if not downsample:
        assert C_in == C_out, "identity path requires C_in == C_out"
    L3 = L // 3
    eps = 1e-5

    if block_n is None:
        # Fold several batch elements per grid step to amortize per-step overhead
        # and constant reads.  (For v7x with large N, cap block_n so the grid keeps
        # >= 2 "parallel" steps and both TensorCores get work.)
        block_n = max(1, min(N, 8))
    n_blocks = -(-N // block_n)
    Npad = n_blocks * block_n

    x_nlc = jnp.transpose(x_ncl, (0, 2, 1)).astype(jnp.float32)      # (N, L, C_in)
    if Npad != N:
        x_nlc = jnp.pad(x_nlc, ((0, Npad - N), (0, 0), (0, 0)))

    # Conv weights (C_out, C_in, k) -> (k, C_in, C_out); bf16 MXU operands.
    w1 = jnp.transpose(params["w1"], (2, 1, 0)).astype(jnp.bfloat16)
    w2 = jnp.transpose(params["w2"], (2, 1, 0)).astype(jnp.bfloat16)
    b1 = params["b1"].reshape(1, C_out).astype(jnp.float32)
    b2 = params["b2"].reshape(1, C_out).astype(jnp.float32)

    def full(arr):
        r = arr.ndim
        return pl.BlockSpec(arr.shape, lambda n, _r=r: (0,) * _r)

    inputs = [x_nlc, w1, b1, w2, b2]
    in_specs = [pl.BlockSpec((block_n, L, C_in), lambda n: (n, 0, 0)),
                full(w1), full(b1), full(w2), full(b2)]

    if downsample:
        wd = jnp.transpose(params["wd"][:, :, 0], (1, 0)).astype(jnp.bfloat16)
        bd = params["bd"].reshape(1, C_out).astype(jnp.float32)
        inputs += [wd, bd]
        in_specs += [full(wd), full(bd)]

    if not first:
        s1 = params["bn1_gamma"] / jnp.sqrt(params["bn1_var"] + eps)
        bn1s = s1.reshape(1, C_in).astype(jnp.float32)
        bn1b = (params["bn1_beta"] - params["bn1_mean"] * s1).reshape(1, C_in).astype(jnp.float32)
        inputs += [bn1s, bn1b]
        in_specs += [full(bn1s), full(bn1b)]

    s2 = params["bn2_gamma"] / jnp.sqrt(params["bn2_var"] + eps)
    bn2s = s2.reshape(1, C_out).astype(jnp.float32)
    bn2b = (params["bn2_beta"] - params["bn2_mean"] * s2).reshape(1, C_out).astype(jnp.float32)
    inputs += [bn2s, bn2b]
    in_specs += [full(bn2s), full(bn2b)]

    kernel = _make_kernel(first=first, downsample=downsample, block_n=block_n,
                          L=L, L3=L3, C_in=C_in, C_out=C_out)

    grid_spec = pltpu.PrefetchScalarGridSpec(
        num_scalar_prefetch=0,
        grid=(n_blocks,),
        in_specs=in_specs,
        out_specs=pl.BlockSpec((block_n, L3, C_out), lambda n: (n, 0, 0)),
        scratch_shapes=[pltpu.VMEM((L + 2, C_in), jnp.float32),
                        pltpu.VMEM((L + 2, C_out), jnp.float32),
                        pltpu.VMEM((L, C_out), jnp.float32)],
    )

    out_nlc = pl.pallas_call(
        kernel,
        out_shape=jax.ShapeDtypeStruct((Npad, L3, C_out), jnp.float32),
        grid_spec=grid_spec,
        compiler_params=pltpu.CompilerParams(dimension_semantics=("parallel",)),
    )(*inputs)

    return jnp.transpose(out_nlc[:N], (0, 2, 1))             # (N, C_out, L3)


def ref_forward(x, params, *, first: bool, downsample: bool):
    """Pure-JAX reference mirroring the PyTorch module (eval-mode BN)."""
    eps = 1e-5

    def bn(v, gamma, beta, mean, var):
        s = gamma / jnp.sqrt(var + eps)
        return v * s[None, :, None] + (beta - mean * s)[None, :, None]

    def lrelu(v):
        return jnp.where(v >= 0, v, 0.3 * v)

    def conv1d(v, w, b, pad):
        y = lax.conv_general_dilated(v, w, window_strides=(1,),
                                     padding=[(pad, pad)],
                                     dimension_numbers=("NCH", "OIH", "NCH"))
        return y + b[None, :, None]

    h = x
    if not first:
        h = lrelu(bn(h, params["bn1_gamma"], params["bn1_beta"],
                     params["bn1_mean"], params["bn1_var"]))
    h = conv1d(h, params["w1"], params["b1"], 1)
    h = lrelu(bn(h, params["bn2_gamma"], params["bn2_beta"],
                 params["bn2_mean"], params["bn2_var"]))
    h = conv1d(h, params["w2"], params["b2"], 1)
    ident = x
    if downsample:
        ident = conv1d(x, params["wd"], params["bd"], 0)
    s = h + ident
    N, C, L = s.shape
    return jnp.max(s.reshape(N, C, L // 3, 3), axis=-1)


def make_params(key, C_in, C_out):
    ks = jax.random.split(key, 14)
    return {
        "w1": jax.random.normal(ks[0], (C_out, C_in, 3), jnp.float32) * 0.2,
        "b1": jax.random.normal(ks[1], (C_out,), jnp.float32) * 0.1,
        "w2": jax.random.normal(ks[2], (C_out, C_out, 3), jnp.float32) * 0.2,
        "b2": jax.random.normal(ks[3], (C_out,), jnp.float32) * 0.1,
        "wd": jax.random.normal(ks[4], (C_out, C_in, 1), jnp.float32) * 0.2,
        "bd": jax.random.normal(ks[5], (C_out,), jnp.float32) * 0.1,
        "bn1_gamma": jax.random.uniform(ks[6], (C_in,), jnp.float32, 0.5, 1.5),
        "bn1_beta": jax.random.normal(ks[7], (C_in,), jnp.float32) * 0.1,
        "bn1_mean": jax.random.normal(ks[8], (C_in,), jnp.float32) * 0.1,
        "bn1_var": jax.random.uniform(ks[9], (C_in,), jnp.float32, 0.5, 1.5),
        "bn2_gamma": jax.random.uniform(ks[10], (C_out,), jnp.float32, 0.5, 1.5),
        "bn2_beta": jax.random.normal(ks[11], (C_out,), jnp.float32) * 0.1,
        "bn2_mean": jax.random.normal(ks[12], (C_out,), jnp.float32) * 0.1,
        "bn2_var": jax.random.uniform(ks[13], (C_out,), jnp.float32, 0.5, 1.5),
    }


if __name__ == "__main__":
    # nb_filts = [4, 8], first=False  -> exercises bn1 + the 1x1 downsample path.
    N, C_in, C_out, L = 2, 4, 8, 24
    first, downsample = False, (C_in != C_out)

    key = jax.random.PRNGKey(0)
    k_x, k_p = jax.random.split(key)
    x = jax.random.normal(k_x, (N, C_in, L), jnp.float32)
    params = make_params(k_p, C_in, C_out)

    out = residual_block_forward(x, params, first=first, downsample=downsample)
    out = jax.block_until_ready(out)

    ref = jax.block_until_ready(ref_forward(x, params, first=first, downsample=downsample))

    assert out.shape == (N, C_out, L // 3), out.shape
    err = float(jnp.max(jnp.abs(out - ref)))
    # bf16 MXU operands -> loosened tolerance (accumulation stays f32).
    assert jnp.allclose(out, ref, atol=5e-2, rtol=5e-2), err
    print("KERNEL_OK")
</pallas_src>

<mosaic_0001>
module attributes {stable_mosaic.version = 11 : i64} {
  func.func @kernel(%arg0: i32, %arg1: memref<2x24x4xf32, #tpu.memory_space<vmem>>, %arg2: memref<3x4x8xbf16, #tpu.memory_space<vmem>>, %arg3: memref<1x8xf32, #tpu.memory_space<vmem>>, %arg4: memref<3x8x8xbf16, #tpu.memory_space<vmem>>, %arg5: memref<1x8xf32, #tpu.memory_space<vmem>>, %arg6: memref<4x8xbf16, #tpu.memory_space<vmem>>, %arg7: memref<1x8xf32, #tpu.memory_space<vmem>>, %arg8: memref<1x4xf32, #tpu.memory_space<vmem>>, %arg9: memref<1x4xf32, #tpu.memory_space<vmem>>, %arg10: memref<1x8xf32, #tpu.memory_space<vmem>>, %arg11: memref<1x8xf32, #tpu.memory_space<vmem>>, %arg12: memref<2x8x8xf32, #tpu.memory_space<vmem>>, %arg13: memref<26x4xf32, #tpu.memory_space<vmem>>, %arg14: memref<26x8xf32, #tpu.memory_space<vmem>>, %arg15: memref<24x8xf32, #tpu.memory_space<vmem>>) attributes {dimension_semantics = [#tpu.dimension_semantics<parallel>], iteration_bounds = array<i64: 1>, scalar_prefetch = 0 : i64, scratch_operands = 3 : i64, tpu.core_type = #tpu.core_type<tc>, window_params = [{transform_indices = @transform_0, window_bounds = array<i64: 2, 24, 4>}, {pipeline_mode = #tpu.pipeline_mode<synchronous>, transform_indices = @transform_1, window_bounds = array<i64: 3, 4, 8>}, {pipeline_mode = #tpu.pipeline_mode<synchronous>, transform_indices = @transform_2, window_bounds = array<i64: 1, 8>}, {pipeline_mode = #tpu.pipeline_mode<synchronous>, transform_indices = @transform_3, window_bounds = array<i64: 3, 8, 8>}, {pipeline_mode = #tpu.pipeline_mode<synchronous>, transform_indices = @transform_4, window_bounds = array<i64: 1, 8>}, {pipeline_mode = #tpu.pipeline_mode<synchronous>, transform_indices = @transform_5, window_bounds = array<i64: 4, 8>}, {pipeline_mode = #tpu.pipeline_mode<synchronous>, transform_indices = @transform_6, window_bounds = array<i64: 1, 8>}, {pipeline_mode = #tpu.pipeline_mode<synchronous>, transform_indices = @transform_7, window_bounds = array<i64: 1, 4>}, {pipeline_mode = #tpu.pipeline_mode<synchronous>, transform_indices = @transform_8, window_bounds = array<i64: 1, 4>}, {pipeline_mode = #tpu.pipeline_mode<synchronous>, transform_indices = @transform_9, window_bounds = array<i64: 1, 8>}, {pipeline_mode = #tpu.pipeline_mode<synchronous>, transform_indices = @transform_10, window_bounds = array<i64: 1, 8>}, {transform_indices = @transform_11, window_bounds = array<i64: 2, 8, 8>}]} {
    %c0 = arith.constant 0 : index
    %c0_0 = arith.constant 0 : index
    %c0_1 = arith.constant 0 : index
    %0 = vector.load %arg2[%c0, %c0_0, %c0_1] : memref<3x4x8xbf16, #tpu.memory_space<vmem>>, vector<1x4x8xbf16>
    %1 = vector.shape_cast %0 : vector<1x4x8xbf16> to vector<4x8xbf16>
    %c1 = arith.constant 1 : index
    %c0_2 = arith.constant 0 : index
    %c0_3 = arith.constant 0 : index
    %2 = vector.load %arg2[%c1, %c0_2, %c0_3] : memref<3x4x8xbf16, #tpu.memory_space<vmem>>, vector<1x4x8xbf16>
    %3 = vector.shape_cast %2 : vector<1x4x8xbf16> to vector<4x8xbf16>
    %c2 = arith.constant 2 : index
    %c0_4 = arith.constant 0 : index
    %c0_5 = arith.constant 0 : index
    %4 = vector.load %arg2[%c2, %c0_4, %c0_5] : memref<3x4x8xbf16, #tpu.memory_space<vmem>>, vector<1x4x8xbf16>
    %5 = vector.shape_cast %4 : vector<1x4x8xbf16> to vector<4x8xbf16>
    %c0_6 = arith.constant 0 : index
    %c0_7 = arith.constant 0 : index
    %c0_8 = arith.constant 0 : index
    %6 = vector.load %arg4[%c0_6, %c0_7, %c0_8] : memref<3x8x8xbf16, #tpu.memory_space<vmem>>, vector<1x8x8xbf16>
    %7 = vector.shape_cast %6 : vector<1x8x8xbf16> to vector<8x8xbf16>
    %c1_9 = arith.constant 1 : index
    %c0_10 = arith.constant 0 : index
    %c0_11 = arith.constant 0 : index
    %8 = vector.load %arg4[%c1_9, %c0_10, %c0_11] : memref<3x8x8xbf16, #tpu.memory_space<vmem>>, vector<1x8x8xbf16>
    %9 = vector.shape_cast %8 : vector<1x8x8xbf16> to vector<8x8xbf16>
    %c2_12 = arith.constant 2 : index
    %c0_13 = arith.constant 0 : index
    %c0_14 = arith.constant 0 : index
    %10 = vector.load %arg4[%c2_12, %c0_13, %c0_14] : memref<3x8x8xbf16, #tpu.memory_space<vmem>>, vector<1x8x8xbf16>
    %11 = vector.shape_cast %10 : vector<1x8x8xbf16> to vector<8x8xbf16>
    %c0_15 = arith.constant 0 : index
    %c0_16 = arith.constant 0 : index
    %12 = vector.load %arg3[%c0_15, %c0_16] : memref<1x8xf32, #tpu.memory_space<vmem>>, vector<1x8xf32>
    %c0_17 = arith.constant 0 : index
    %c0_18 = arith.constant 0 : index
    %13 = vector.load %arg5[%c0_17, %c0_18] : memref<1x8xf32, #tpu.memory_space<vmem>>, vector<1x8xf32>
    %c0_19 = arith.constant 0 : index
    %c0_20 = arith.constant 0 : index
    %14 = vector.load %arg10[%c0_19, %c0_20] : memref<1x8xf32, #tpu.memory_space<vmem>>, vector<1x8xf32>
    %c0_21 = arith.constant 0 : index
    %c0_22 = arith.constant 0 : index
    %15 = vector.load %arg11[%c0_21, %c0_22] : memref<1x8xf32, #tpu.memory_space<vmem>>, vector<1x8xf32>
    %c0_23 = arith.constant 0 : index
    %c0_24 = arith.constant 0 : index
    %16 = vector.load %arg6[%c0_23, %c0_24] : memref<4x8xbf16, #tpu.memory_space<vmem>>, vector<4x8xbf16>
    %c0_25 = arith.constant 0 : index
    %c0_26 = arith.constant 0 : index
    %17 = vector.load %arg7[%c0_25, %c0_26] : memref<1x8xf32, #tpu.memory_space<vmem>>, vector<1x8xf32>
    %c0_27 = arith.constant 0 : index
    %c0_28 = arith.constant 0 : index
    %18 = vector.load %arg8[%c0_27, %c0_28] : memref<1x4xf32, #tpu.memory_space<vmem>>, vector<1x4xf32>
    %c0_29 = arith.constant 0 : index
    %c0_30 = arith.constant 0 : index
    %19 = vector.load %arg9[%c0_29, %c0_30] : memref<1x4xf32, #tpu.memory_space<vmem>>, vector<1x4xf32>
    %cst = arith.constant 0.000000e+00 : f32
    %20 = vector.broadcast %cst : f32 to vector<26x4xf32>
    %c0_31 = arith.constant 0 : index
    %c0_32 = arith.constant 0 : index
    %21 = vector.load %arg13[%c0_31, %c0_32] : memref<26x4xf32, #tpu.memory_space<vmem>>, vector<26x4xf32>
    tpu.vector_store %arg13[%c0_31, %c0_32], %20 {strides = array<i32>} : memref<26x4xf32, #tpu.memory_space<vmem>>, vector<26x4xf32>,
    %cst_33 = arith.constant 0.000000e+00 : f32
    %22 = vector.broadcast %cst_33 : f32 to vector<26x8xf32>
    %c0_34 = arith.constant 0 : index
    %c0_35 = arith.constant 0 : index
    %23 = vector.load %arg14[%c0_34, %c0_35] : memref<26x8xf32, #tpu.memory_space<vmem>>, vector<26x8xf32>
    tpu.vector_store %arg14[%c0_34, %c0_35], %22 {strides = array<i32>} : memref<26x8xf32, #tpu.memory_space<vmem>>, vector<26x8xf32>,
    %c0_36 = arith.constant 0 : index
    %c0_37 = arith.constant 0 : index
    %c0_38 = arith.constant 0 : index
    %24 = vector.load %arg1[%c0_36, %c0_37, %c0_38] : memref<2x24x4xf32, #tpu.memory_space<vmem>>, vector<1x24x4xf32>
    %25 = vector.shape_cast %24 : vector<1x24x4xf32> to vector<24x4xf32>
    %26 = vector.broadcast %18 : vector<1x4xf32> to vector<24x4xf32>
    %27 = arith.mulf %25, %26 : vector<24x4xf32>
    %28 = vector.broadcast %19 : vector<1x4xf32> to vector<24x4xf32>
    %29 = arith.addf %27, %28 : vector<24x4xf32>
    %cst_39 = arith.constant 0.000000e+00 : f32
    %30 = vector.broadcast %cst_39 : f32 to vector<24x4xf32>
    %31 = arith.cmpf oge, %29, %30 : vector<24x4xf32>
    %cst_40 = arith.constant 3.000000e-01 : f32
    %32 = vector.broadcast %cst_40 : f32 to vector<24x4xf32>
    %33 = arith.mulf %32, %29 : vector<24x4xf32>
    %34 = arith.select %31, %29, %33 : vector<24x4xi1>, vector<24x4xf32>
    %c1_41 = arith.constant 1 : index
    %c0_42 = arith.constant 0 : index
    %35 = vector.load %arg13[%c1_41, %c0_42] : memref<26x4xf32, #tpu.memory_space<vmem>>, vector<24x4xf32>
    tpu.vector_store %arg13[%c1_41, %c0_42], %34 {strides = array<i32>} : memref<26x4xf32, #tpu.memory_space<vmem>>, vector<24x4xf32>,
    %c0_43 = arith.constant 0 : index
    %c0_44 = arith.constant 0 : index
    %36 = vector.load %arg13[%c0_43, %c0_44] : memref<26x4xf32, #tpu.memory_space<vmem>>, vector<24x4xf32>
    %c2_45 = arith.constant 2 : index
    %c0_46 = arith.constant 0 : index
    %37 = vector.load %arg13[%c2_45, %c0_46] : memref<26x4xf32, #tpu.memory_space<vmem>>, vector<24x4xf32>
    %38 = arith.truncf %36 : vector<24x4xf32> to vector<24x4xbf16>
    %cst_47 = arith.constant dense<0.000000e+00> : vector<24x8xf32>
    %39 = tpu.matmul %38, %1, %cst_47 {dimension_numbers = #tpu.dot_dimension_numbers<[1], [0], [0], [1], [0, 0, 1, 1], [], []>} : vector<24x4xbf16>, vector<4x8xbf16>, vector<24x8xf32> -> vector<24x8xf32>
    %40 = arith.truncf %34 : vector<24x4xf32> to vector<24x4xbf16>
    %cst_48 = arith.constant dense<0.000000e+00> : vector<24x8xf32>
    %41 = tpu.matmul %40, %3, %cst_48 {dimension_numbers = #tpu.dot_dimension_numbers<[1], [0], [0], [1], [0, 0, 1, 1], [], []>} : vector<24x4xbf16>, vector<4x8xbf16>, vector<24x8xf32> -> vector<24x8xf32>
    %42 = arith.addf %39, %41 : vector<24x8xf32>
    %43 = arith.truncf %37 : vector<24x4xf32> to vector<24x4xbf16>
    %cst_49 = arith.constant dense<0.000000e+00> : vector<24x8xf32>
    %44 = tpu.matmul %43, %5, %cst_49 {dimension_numbers = #tpu.dot_dimension_numbers<[1], [0], [0], [1], [0, 0, 1, 1], [], []>} : vector<24x4xbf16>, vector<4x8xbf16>, vector<24x8xf32> -> vector<24x8xf32>
    %45 = arith.addf %42, %44 : vector<24x8xf32>
    %46 = vector.broadcast %12 : vector<1x8xf32> to vector<24x8xf32>
    %47 = arith.addf %45, %46 : vector<24x8xf32>
    %48 = vector.broadcast %14 : vector<1x8xf32> to vector<24x8xf32>
    %49 = arith.mulf %47, %48 : vector<24x8xf32>
    %50 = vector.broadcast %15 : vector<1x8xf32> to vector<24x8xf32>
    %51 = arith.addf %49, %50 : vector<24x8xf32>
    %cst_50 = arith.constant 0.000000e+00 : f32
    %52 = vector.broadcast %cst_50 : f32 to vector<24x8xf32>
    %53 = arith.cmpf oge, %51, %52 : vector<24x8xf32>
    %cst_51 = arith.constant 3.000000e-01 : f32
    %54 = vector.broadcast %cst_51 : f32 to vector<24x8xf32>
    %55 = arith.mulf %54, %51 : vector<24x8xf32>
    %56 = arith.select %53, %51, %55 : vector<24x8xi1>, vector<24x8xf32>
    %c1_52 = arith.constant 1 : index
    %c0_53 = arith.constant 0 : index
    %57 = vector.load %arg14[%c1_52, %c0_53] : memref<26x8xf32, #tpu.memory_space<vmem>>, vector<24x8xf32>
    tpu.vector_store %arg14[%c1_52, %c0_53], %56 {strides = array<i32>} : memref<26x8xf32, #tpu.memory_space<vmem>>, vector<24x8xf32>,
    %c0_54 = arith.constant 0 : index
    %c0_55 = arith.constant 0 : index
    %58 = vector.load %arg14[%c0_54, %c0_55] : memref<26x8xf32, #tpu.memory_space<vmem>>, vector<24x8xf32>
    %c2_56 = arith.constant 2 : index
    %c0_57 = arith.constant 0 : index
    %59 = vector.load %arg14[%c2_56, %c0_57] : memref<26x8xf32, #tpu.memory_space<vmem>>, vector<24x8xf32>
    %60 = arith.truncf %58 : vector<24x8xf32> to vector<24x8xbf16>
    %cst_58 = arith.constant dense<0.000000e+00> : vector<24x8xf32>
    %61 = tpu.matmul %60, %7, %cst_58 {dimension_numbers = #tpu.dot_dimension_numbers<[1], [0], [0], [1], [0, 0, 1, 1], [], []>} : vector<24x8xbf16>, vector<8x8xbf16>, vector<24x8xf32> -> vector<24x8xf32>
    %62 = arith.truncf %56 : vector<24x8xf32> to vector<24x8xbf16>
    %cst_59 = arith.constant dense<0.000000e+00> : vector<24x8xf32>
    %63 = tpu.matmul %62, %9, %cst_59 {dimension_numbers = #tpu.dot_dimension_numbers<[1], [0], [0], [1], [0, 0, 1, 1], [], []>} : vector<24x8xbf16>, vector<8x8xbf16>, vector<24x8xf32> -> vector<24x8xf32>
    %64 = arith.addf %61, %63 : vector<24x8xf32>
    %65 = arith.truncf %59 : vector<24x8xf32> to vector<24x8xbf16>
    %cst_60 = arith.constant dense<0.000000e+00> : vector<24x8xf32>
    %66 = tpu.matmul %65, %11, %cst_60 {dimension_numbers = #tpu.dot_dimension_numbers<[1], [0], [0], [1], [0, 0, 1, 1], [], []>} : vector<24x8xbf16>, vector<8x8xbf16>, vector<24x8xf32> -> vector<24x8xf32>
    %67 = arith.addf %64, %66 : vector<24x8xf32>
    %68 = vector.broadcast %13 : vector<1x8xf32> to vector<24x8xf32>
    %69 = arith.addf %67, %68 : vector<24x8xf32>
    %70 = arith.truncf %25 : vector<24x4xf32> to vector<24x4xbf16>
    %cst_61 = arith.constant dense<0.000000e+00> : vector<24x8xf32>
    %71 = tpu.matmul %70, %16, %cst_61 {dimension_numbers = #tpu.dot_dimension_numbers<[1], [0], [0], [1], [0, 0, 1, 1], [], []>} : vector<24x4xbf16>, vector<4x8xbf16>, vector<24x8xf32> -> vector<24x8xf32>
    %72 = vector.broadcast %17 : vector<1x8xf32> to vector<24x8xf32>
    %73 = arith.addf %71, %72 : vector<24x8xf32>
    %74 = arith.addf %69, %73 : vector<24x8xf32>
    %c0_62 = arith.constant 0 : index
    %c0_63 = arith.constant 0 : index
    %75 = vector.load %arg15[%c0_62, %c0_63] : memref<24x8xf32, #tpu.memory_space<vmem>>, vector<24x8xf32>
    tpu.vector_store %arg15[%c0_62, %c0_63], %74 {strides = array<i32>} : memref<24x8xf32, #tpu.memory_space<vmem>>, vector<24x8xf32>,
    %c0_64 = arith.constant 0 : index
    %c0_65 = arith.constant 0 : index
    %76 = tpu.strided_load %arg15[%c0_64, %c0_65] {strides = array<i32: 3, 1>} : memref<24x8xf32, #tpu.memory_space<vmem>>, vector<8x8xf32>
    %c1_66 = arith.constant 1 : index
    %c0_67 = arith.constant 0 : index
    %77 = tpu.strided_load %arg15[%c1_66, %c0_67] {strides = array<i32: 3, 1>} : memref<24x8xf32, #tpu.memory_space<vmem>>, vector<8x8xf32>
    %c2_68 = arith.constant 2 : index
    %c0_69 = arith.constant 0 : index
    %78 = tpu.strided_load %arg15[%c2_68, %c0_69] {strides = array<i32: 3, 1>} : memref<24x8xf32, #tpu.memory_space<vmem>>, vector<8x8xf32>
    %79 = arith.maximumf %76, %77 : vector<8x8xf32>
    %80 = arith.maximumf %79, %78 : vector<8x8xf32>
    %c0_70 = arith.constant 0 : index
    %c0_71 = arith.constant 0 : index
    %c0_72 = arith.constant 0 : index
    %81 = vector.load %arg12[%c0_70, %c0_71, %c0_72] : memref<2x8x8xf32, #tpu.memory_space<vmem>>, vector<1x8x8xf32>
    %82 = vector.shape_cast %81 : vector<1x8x8xf32> to vector<8x8xf32>
    %83 = vector.shape_cast %80 : vector<8x8xf32> to vector<1x8x8xf32>
    tpu.vector_store %arg12[%c0_70, %c0_71, %c0_72], %83 {strides = array<i32>} : memref<2x8x8xf32, #tpu.memory_space<vmem>>, vector<1x8x8xf32>,
    %c1_73 = arith.constant 1 : index
    %c0_74 = arith.constant 0 : index
    %c0_75 = arith.constant 0 : index
    %84 = vector.load %arg1[%c1_73, %c0_74, %c0_75] : memref<2x24x4xf32, #tpu.memory_space<vmem>>, vector<1x24x4xf32>
    %85 = vector.shape_cast %84 : vector<1x24x4xf32> to vector<24x4xf32>
    %86 = vector.broadcast %18 : vector<1x4xf32> to vector<24x4xf32>
    %87 = arith.mulf %85, %86 : vector<24x4xf32>
    %88 = vector.broadcast %19 : vector<1x4xf32> to vector<24x4xf32>
    %89 = arith.addf %87, %88 : vector<24x4xf32>
    %cst_76 = arith.constant 0.000000e+00 : f32
    %90 = vector.broadcast %cst_76 : f32 to vector<24x4xf32>
    %91 = arith.cmpf oge, %89, %90 : vector<24x4xf32>
    %cst_77 = arith.constant 3.000000e-01 : f32
    %92 = vector.broadcast %cst_77 : f32 to vector<24x4xf32>
    %93 = arith.mulf %92, %89 : vector<24x4xf32>
    %94 = arith.select %91, %89, %93 : vector<24x4xi1>, vector<24x4xf32>
    %c1_78 = arith.constant 1 : index
    %c0_79 = arith.constant 0 : index
    %95 = vector.load %arg13[%c1_78, %c0_79] : memref<26x4xf32, #tpu.memory_space<vmem>>, vector<24x4xf32>
    tpu.vector_store %arg13[%c1_78, %c0_79], %94 {strides = array<i32>} : memref<26x4xf32, #tpu.memory_space<vmem>>, vector<24x4xf32>,
    %c0_80 = arith.constant 0 : index
    %c0_81 = arith.constant 0 : index
    %96 = vector.load %arg13[%c0_80, %c0_81] : memref<26x4xf32, #tpu.memory_space<vmem>>, vector<24x4xf32>
    %c2_82 = arith.constant 2 : index
    %c0_83 = arith.constant 0 : index
    %97 = vector.load %arg13[%c2_82, %c0_83] : memref<26x4xf32, #tpu.memory_space<vmem>>, vector<24x4xf32>
    %98 = arith.truncf %96 : vector<24x4xf32> to vector<24x4xbf16>
    %cst_84 = arith.constant dense<0.000000e+00> : vector<24x8xf32>
    %99 = tpu.matmul %98, %1, %cst_84 {dimension_numbers = #tpu.dot_dimension_numbers<[1], [0], [0], [1], [0, 0, 1, 1], [], []>} : vector<24x4xbf16>, vector<4x8xbf16>, vector<24x8xf32> -> vector<24x8xf32>
    %100 = arith.truncf %94 : vector<24x4xf32> to vector<24x4xbf16>
    %cst_85 = arith.constant dense<0.000000e+00> : vector<24x8xf32>
    %101 = tpu.matmul %100, %3, %cst_85 {dimension_numbers = #tpu.dot_dimension_numbers<[1], [0], [0], [1], [0, 0, 1, 1], [], []>} : vector<24x4xbf16>, vector<4x8xbf16>, vector<24x8xf32> -> vector<24x8xf32>
    %102 = arith.addf %99, %101 : vector<24x8xf32>
    %103 = arith.truncf %97 : vector<24x4xf32> to vector<24x4xbf16>
    %cst_86 = arith.constant dense<0.000000e+00> : vector<24x8xf32>
    %104 = tpu.matmul %103, %5, %cst_86 {dimension_numbers = #tpu.dot_dimension_numbers<[1], [0], [0], [1], [0, 0, 1, 1], [], []>} : vector<24x4xbf16>, vector<4x8xbf16>, vector<24x8xf32> -> vector<24x8xf32>
    %105 = arith.addf %102, %104 : vector<24x8xf32>
    %106 = vector.broadcast %12 : vector<1x8xf32> to vector<24x8xf32>
    %107 = arith.addf %105, %106 : vector<24x8xf32>
    %108 = vector.broadcast %14 : vector<1x8xf32> to vector<24x8xf32>
    %109 = arith.mulf %107, %108 : vector<24x8xf32>
    %110 = vector.broadcast %15 : vector<1x8xf32> to vector<24x8xf32>
    %111 = arith.addf %109, %110 : vector<24x8xf32>
    %cst_87 = arith.constant 0.000000e+00 : f32
    %112 = vector.broadcast %cst_87 : f32 to vector<24x8xf32>
    %113 = arith.cmpf oge, %111, %112 : vector<24x8xf32>
    %cst_88 = arith.constant 3.000000e-01 : f32
    %114 = vector.broadcast %cst_88 : f32 to vector<24x8xf32>
    %115 = arith.mulf %114, %111 : vector<24x8xf32>
    %116 = arith.select %113, %111, %115 : vector<24x8xi1>, vector<24x8xf32>
    %c1_89 = arith.constant 1 : index
    %c0_90 = arith.constant 0 : index
    %117 = vector.load %arg14[%c1_89, %c0_90] : memref<26x8xf32, #tpu.memory_space<vmem>>, vector<24x8xf32>
    tpu.vector_store %arg14[%c1_89, %c0_90], %116 {strides = array<i32>} : memref<26x8xf32, #tpu.memory_space<vmem>>, vector<24x8xf32>,
    %c0_91 = arith.constant 0 : index
    %c0_92 = arith.constant 0 : index
    %118 = vector.load %arg14[%c0_91, %c0_92] : memref<26x8xf32, #tpu.memory_space<vmem>>, vector<24x8xf32>
    %c2_93 = arith.constant 2 : index
    %c0_94 = arith.constant 0 : index
    %119 = vector.load %arg14[%c2_93, %c0_94] : memref<26x8xf32, #tpu.memory_space<vmem>>, vector<24x8xf32>
    %120 = arith.truncf %118 : vector<24x8xf32> to vector<24x8xbf16>
    %cst_95 = arith.constant dense<0.000000e+00> : vector<24x8xf32>
    %121 = tpu.matmul %120, %7, %cst_95 {dimension_numbers = #tpu.dot_dimension_numbers<[1], [0], [0], [1], [0, 0, 1, 1], [], []>} : vector<24x8xbf16>, vector<8x8xbf16>, vector<24x8xf32> -> vector<24x8xf32>
    %122 = arith.truncf %116 : vector<24x8xf32> to vector<24x8xbf16>
    %cst_96 = arith.constant dense<0.000000e+00> : vector<24x8xf32>
    %123 = tpu.matmul %122, %9, %cst_96 {dimension_numbers = #tpu.dot_dimension_numbers<[1], [0], [0], [1], [0, 0, 1, 1], [], []>} : vector<24x8xbf16>, vector<8x8xbf16>, vector<24x8xf32> -> vector<24x8xf32>
    %124 = arith.addf %121, %123 : vector<24x8xf32>
    %125 = arith.truncf %119 : vector<24x8xf32> to vector<24x8xbf16>
    %cst_97 = arith.constant dense<0.000000e+00> : vector<24x8xf32>
    %126 = tpu.matmul %125, %11, %cst_97 {dimension_numbers = #tpu.dot_dimension_numbers<[1], [0], [0], [1], [0, 0, 1, 1], [], []>} : vector<24x8xbf16>, vector<8x8xbf16>, vector<24x8xf32> -> vector<24x8xf32>
    %127 = arith.addf %124, %126 : vector<24x8xf32>
    %128 = vector.broadcast %13 : vector<1x8xf32> to vector<24x8xf32>
    %129 = arith.addf %127, %128 : vector<24x8xf32>
    %130 = arith.truncf %85 : vector<24x4xf32> to vector<24x4xbf16>
    %cst_98 = arith.constant dense<0.000000e+00> : vector<24x8xf32>
    %131 = tpu.matmul %130, %16, %cst_98 {dimension_numbers = #tpu.dot_dimension_numbers<[1], [0], [0], [1], [0, 0, 1, 1], [], []>} : vector<24x4xbf16>, vector<4x8xbf16>, vector<24x8xf32> -> vector<24x8xf32>
    %132 = vector.broadcast %17 : vector<1x8xf32> to vector<24x8xf32>
    %133 = arith.addf %131, %132 : vector<24x8xf32>
    %134 = arith.addf %129, %133 : vector<24x8xf32>
    %c0_99 = arith.constant 0 : index
    %c0_100 = arith.constant 0 : index
    %135 = vector.load %arg15[%c0_99, %c0_100] : memref<24x8xf32, #tpu.memory_space<vmem>>, vector<24x8xf32>
    tpu.vector_store %arg15[%c0_99, %c0_100], %134 {strides = array<i32>} : memref<24x8xf32, #tpu.memory_space<vmem>>, vector<24x8xf32>,
    %c0_101 = arith.constant 0 : index
    %c0_102 = arith.constant 0 : index
    %136 = tpu.strided_load %arg15[%c0_101, %c0_102] {strides = array<i32: 3, 1>} : memref<24x8xf32, #tpu.memory_space<vmem>>, vector<8x8xf32>
    %c1_103 = arith.constant 1 : index
    %c0_104 = arith.constant 0 : index
    %137 = tpu.strided_load %arg15[%c1_103, %c0_104] {strides = array<i32: 3, 1>} : memref<24x8xf32, #tpu.memory_space<vmem>>, vector<8x8xf32>
    %c2_105 = arith.constant 2 : index
    %c0_106 = arith.constant 0 : index
    %138 = tpu.strided_load %arg15[%c2_105, %c0_106] {strides = array<i32: 3, 1>} : memref<24x8xf32, #tpu.memory_space<vmem>>, vector<8x8xf32>
    %139 = arith.maximumf %136, %137 : vector<8x8xf32>
    %140 = arith.maximumf %139, %138 : vector<8x8xf32>
    %c1_107 = arith.constant 1 : index
    %c0_108 = arith.constant 0 : index
    %c0_109 = arith.constant 0 : index
    %141 = vector.load %arg12[%c1_107, %c0_108, %c0_109] : memref<2x8x8xf32, #tpu.memory_space<vmem>>, vector<1x8x8xf32>
    %142 = vector.shape_cast %141 : vector<1x8x8xf32> to vector<8x8xf32>
    %143 = vector.shape_cast %140 : vector<8x8xf32> to vector<1x8x8xf32>
    tpu.vector_store %arg12[%c1_107, %c0_108, %c0_109], %143 {strides = array<i32>} : memref<2x8x8xf32, #tpu.memory_space<vmem>>, vector<1x8x8xf32>,
    return
  }
  func.func @transform_0(%arg0: i32) -> (i32, i32, i32) {
    %c0_i32 = arith.constant 0 : i32
    %c0_i32_0 = arith.constant 0 : i32
    %c0_i32_1 = arith.constant 0 : i32
    return %arg0, %c0_i32, %c0_i32_0 : i32, i32, i32
  }
  func.func @transform_1(%arg0: i32) -> (i32, i32, i32) {
    %c0_i32 = arith.constant 0 : i32
    %c0_i32_0 = arith.constant 0 : i32
    %c0_i32_1 = arith.constant 0 : i32
    %c0_i32_2 = arith.constant 0 : i32
    return %c0_i32, %c0_i32_0, %c0_i32_1 : i32, i32, i32
  }
  func.func @transform_2(%arg0: i32) -> (i32, i32) {
    %c0_i32 = arith.constant 0 : i32
    %c0_i32_0 = arith.constant 0 : i32
    %c0_i32_1 = arith.constant 0 : i32
    return %c0_i32, %c0_i32_0 : i32, i32
  }
  func.func @transform_3(%arg0: i32) -> (i32, i32, i32) {
    %c0_i32 = arith.constant 0 : i32
    %c0_i32_0 = arith.constant 0 : i32
    %c0_i32_1 = arith.constant 0 : i32
    %c0_i32_2 = arith.constant 0 : i32
    return %c0_i32, %c0_i32_0, %c0_i32_1 : i32, i32, i32
  }
  func.func @transform_4(%arg0: i32) -> (i32, i32) {
    %c0_i32 = arith.constant 0 : i32
    %c0_i32_0 = arith.constant 0 : i32
    %c0_i32_1 = arith.constant 0 : i32
    return %c0_i32, %c0_i32_0 : i32, i32
  }
  func.func @transform_5(%arg0: i32) -> (i32, i32) {
    %c0_i32 = arith.constant 0 : i32
    %c0_i32_0 = arith.constant 0 : i32
    %c0_i32_1 = arith.constant 0 : i32
    return %c0_i32, %c0_i32_0 : i32, i32
  }
  func.func @transform_6(%arg0: i32) -> (i32, i32) {
    %c0_i32 = arith.constant 0 : i32
    %c0_i32_0 = arith.constant 0 : i32
    %c0_i32_1 = arith.constant 0 : i32
    return %c0_i32, %c0_i32_0 : i32, i32
  }
  func.func @transform_7(%arg0: i32) -> (i32, i32) {
    %c0_i32 = arith.constant 0 : i32
    %c0_i32_0 = arith.constant 0 : i32
    %c0_i32_1 = arith.constant 0 : i32
    return %c0_i32, %c0_i32_0 : i32, i32
  }
  func.func @transform_8(%arg0: i32) -> (i32, i32) {
    %c0_i32 = arith.constant 0 : i32
    %c0_i32_0 = arith.constant 0 : i32
    %c0_i32_1 = arith.constant 0 : i32
    return %c0_i32, %c0_i32_0 : i32, i32
  }
  func.func @transform_9(%arg0: i32) -> (i32, i32) {
    %c0_i32 = arith.constant 0 : i32
    %c0_i32_0 = arith.constant 0 : i32
    %c0_i32_1 = arith.constant 0 : i32
    return %c0_i32, %c0_i32_0 : i32, i32
  }
  func.func @transform_10(%arg0: i32) -> (i32, i32) {
    %c0_i32 = arith.constant 0 : i32
    %c0_i32_0 = arith.constant 0 : i32
    %c0_i32_1 = arith.constant 0 : i32
    return %c0_i32, %c0_i32_0 : i32, i32
  }
  func.func @transform_11(%arg0: i32) -> (i32, i32, i32) {
    %c0_i32 = arith.constant 0 : i32
    %c0_i32_0 = arith.constant 0 : i32
    %c0_i32_1 = arith.constant 0 : i32
    return %arg0, %c0_i32, %c0_i32_0 : i32, i32, i32
  }
}

</mosaic_0001>

<bundles_post_ra>
// kernel: tpu_custom_call.1
= control target key start
LH: loop header
LB: loop body
LE: loop exit
PB: predicated region body
PF: predicated region fallthrough
CT: control target
= control target key end

     0   :  { %vm113_vm0 = vcmask 1041408   ;;  %vm58_vm1 = vcmask 31744   ;;  %v722_v5 = vmov 0.0   ;;  %vm62_vm2 = vcmask 25600   ;;  %s1014_s0 = inlined_call_operand.vmem [shape: f32[2,24,4], index: 0, kind: input, shape index: {}]   ;;  %s1015_s1 = inlined_call_operand.vmem [shape: bf16[3,4,8], index: 1, kind: input, shape index: {}]   ;;  %s1016_s2 = inlined_call_operand.vmem [shape: f32[1,8], index: 2, kind: input, shape index: {}]   ;;  %s1017_s3 = inlined_call_operand.vmem [shape: bf16[3,8,8], index: 3, kind: input, shape index: {}]   ;;  %s1018_s4 = inlined_call_operand.vmem [shape: f32[1,8], index: 4, kind: input, shape index: {}]   ;;  %s1019_s5 = inlined_call_operand.vmem [shape: bf16[4,8], index: 5, kind: input, shape index: {}]   ;;  %s1020_s6 = inlined_call_operand.vmem [shape: f32[1,8], index: 6, kind: input, shape index: {}]   ;;  %s1021_s7 = inlined_call_operand.vmem [shape: f32[1,4], index: 7, kind: input, shape index: {}]   ;;  %s1022_s8 = inlined_call_operand.vmem [shape: f32[1,4], index: 8, kind: input, shape index: {}]   ;;  %s1023_s9 = inlined_call_operand.vmem [shape: f32[1,8], index: 9, kind: input, shape index: {}]   ;;  %s1024_s10 = inlined_call_operand.vmem [shape: f32[1,8], index: 10, kind: input, shape index: {}]   ;;  %s1025_s11 = inlined_call_operand.hbm [shape: f32[2,8,8], index: 11, kind: output, shape index: {}]  }
   0x1   :  { %v650_v0 = vld [vmem:[%s1015_s1 + $0x2] sm:$0x3]  ;;  %v56_v1 = vld [vmem:[%s1021_s7] sm:$0x1]  ;;  %59 = vst.msk [vmem:[#allocation2] sm:$0xff] %vm58_vm1, %v722_v5  ;;  %v809_v6 = vld [vmem:[%s1014_s0 + $0x8] sm:$0xff] }
   0x2   :  { %v793_v2 = vsel %vm113_vm0, %v650_v0, 0  ;;  %v57_v3 = vld [vmem:[%s1022_s8] sm:$0x1]  ;;  %v814_v7 = vld [vmem:[%s1014_s0 + $0x10] sm:$0xff]  ;;  %v816_v8 = vperm.slane %v56_v1, 0  ;;  %60 = vst.msk [vmem:[#allocation2 + $0x8] sm:$0xff] %vm58_vm1, %v722_v5 }
   0x3   :  { %v801_v4 = vld [vmem:[%s1014_s0] sm:$0xff]  ;;  %685 = vmatpush.bf16.msra.mxu2 %v793_v2  ;;  %v818_v9 = vperm.slane %v57_v3, 0  ;;  %124 = vmatpush.bf16.msra.mxu0 %v793_v2  ;;  %61 = vst.msk [vmem:[#allocation2 + $0x10] sm:$0xff] %vm58_vm1, %v722_v5 }
   0x4   :  { %v651_v10 = vld [vmem:[%s1015_s1 + $0x4] sm:$0x3]  ;;  %v40_v11 = vld [vmem:[%s1015_s1] sm:$0x3]  ;;  %v76_v12 = vmul.f32 %v816_v8, %v801_v4  ;;  %v77_v13 = vmul.f32 %v816_v8, %v809_v6  ;;  %v78_v14 = vmul.f32 %v816_v8, %v814_v7  ;;  %63 = vst.msk [vmem:[#allocation2 + $0x18] sm:$0x3] %vm62_vm2, %v722_v5 }
   0x5   :  { %v171_v15 = vsel %vm113_vm0, %v651_v10, 0  ;;  %v142_v16 = vsel %vm113_vm0, %v40_v11, 0 }
   0x6   :  { %v82_v17 = vadd.f32 %v818_v9, %v76_v12  ;;  %v83_v18 = vadd.f32 %v818_v9, %v77_v13  ;;  %v84_v19 = vadd.f32 %v818_v9, %v78_v14  ;;  %686 = vmatpush.bf16.msra.mxu3 %v142_v16  ;;  %151 = vmatpush.bf16.msra.mxu1 %v142_v16 }
   0x7   :  { %180 = vmatpush.bf16.msrb.mxu2 %v171_v15 }
   0x8   :  { %16 = vsyncpa [#allocation6], 0  ;;  %vm85_vm3 = vcmp.ge.f32.partialorder %v82_v17, 0.0  ;;  %vm86_vm4 = vcmp.ge.f32.partialorder %v83_v18, 0.0  ;;  %vm87_vm5 = vcmp.ge.f32.partialorder %v84_v19, 0.0  ;;  %vm64_vm6 = vcmask 64512  }
   0x9   :  { %v88_v20 = vmul.f32 0.3, %v82_v17  ;;  %v89_v21 = vmul.f32 0.3, %v83_v18  ;;  %v90_v22 = vmul.f32 0.3, %v84_v19  ;;  %v327_v53 = vpack.c.bf16 %v809_v6, %v801_v4 }
   0xa   :  { %65 = vst.msk [vmem:[#allocation3] sm:$0xff] %vm64_vm6, %v722_v5  ;;  %v652_v39 = vld [vmem:[%s1017_s3 + $0x4] sm:$0xf]  ;;  %vm240_vm7 = vcmask 1043456   ;;  %v45_v41 = vld [vmem:[%s1017_s3] sm:$0xf] }
   0xb   :  { %v91_v23 = vsel %vm85_vm3, %v82_v17, %v88_v20  ;;  %v92_v24 = vsel %vm86_vm4, %v83_v18, %v89_v21  ;;  %v93_v25 = vsel %vm87_vm5, %v84_v19, %v90_v22  ;;  %66 = vst.msk [vmem:[#allocation3 + $0x8] sm:$0xff] %vm64_vm6, %v722_v5  ;;  %v242_v40 = vsel %vm240_vm7, %v652_v39, 0  ;;  %v653_v42 = vld [vmem:[%s1017_s3 + $0x8] sm:$0xf]  ;;  %v54_v50 = vld [vmem:[%s1019_s5] sm:$0x3] }
   0xc   :  { %94 = vst.msk [vmem:[#allocation2 + $0x1] sm:$0xff] %vm58_vm1, %v91_v23  ;;  %v106_v26 = vpack.c.bf16 %v93_v25, %v93_v25  ;;  %v105_v27 = vpack.c.bf16 %v92_v24, %v91_v23  ;;  %251 = vmatpush.bf16.msrb.mxu3 %v242_v40  ;;  %v868_v44 = vsel %vm240_vm7, %v45_v41, 0  ;;  %v870_v45 = vsel %vm240_vm7, %v653_v42, 0  ;;  %v881_v51 = vld [vmem:[%s1016_s2] ss:$0 sm:$0xff]  ;;  %v909_v10 = vld [vmem:[%s1014_s0 + $0x18] sm:$0xff] }
   0xd   :  { %95 = vst.msk [vmem:[#allocation2 + $0x9] sm:$0xff] %vm58_vm1, %v92_v24  ;;  %278 = vmatpush.bf16.msrb.mxu0 %v868_v44  ;;  %307 = vmatpush.bf16.msrb.mxu1 %v870_v45  ;;  %vm68_vm8 = vcmask 58368   ;;  %v884_v52 = vsel %vm113_vm0, %v54_v50, 0  ;;  %v892_v56 = vld [vmem:[%s1023_s9] ss:$0 sm:$0xff]  ;;  %v377_v12 = vmul.f32 %v909_v10, %v816_v8  ;;  %s638_s29 = sshll.u32 %s1025_s11, 4  ;;  %s639_s29 = int_to_ptr.hbm [resolvable:$true] %s638_s29 }
   0xe   :  { %96 = vst.msk [vmem:[#allocation2 + $0x11] sm:$0xff] %vm58_vm1, %v93_v25  ;;  %655 = vmatmul.msk.bf16.vlgmr.msra.gmra.mxu2 %vm58_vm1, %v106_v26  ;;  %654 = vmatmul.msk.bf16.vlgmr.msra.gmra.mxu0 %vm58_vm1, %v105_v27  ;;  %v898_v59 = vld [vmem:[%s1024_s10] ss:$0 sm:$0xff]  ;;  %s724_s30 = smov 128   ;;  %s725_s1 = smov 8  }
   0xf   :  { %67 = vst.msk [vmem:[#allocation3 + $0x10] sm:$0xff] %vm64_vm6, %v722_v5  ;;  %348 = vmatpush.bf16.msra.mxu2 %v884_v52  ;;  %v914_v11 = vld [vmem:[%s1014_s0 + $0x20] sm:$0xff]  ;;  %v380_v18 = vadd.f32 %v377_v12, %v818_v9 }
  0x10   :  { %69 = vst.msk [vmem:[#allocation3 + $0x18] sm:$0x3] %vm68_vm8, %v722_v5  ;;  %v378_v13 = vmul.f32 %v914_v11, %v816_v8  ;;  %v965_v12 = vld [vmem:[%s1018_s4] ss:$0 sm:$0xff]  ;;  %s723_s4 = smov [#allocation5]  }
  0x11   :  { %442 = vmatpush.bf16.msra.mxu0 %v142_v16  ;;  %v328_v16 = vpack.c.bf16 %v814_v7, %v814_v7  ;;  %v386_v22 = vmul.f32 0.3, %v380_v18  ;;  %vm383_vm11 = vcmp.ge.f32.partialorder %v380_v18, 0.0 }
  0x12   :  { %v381_v19 = vadd.f32 %v378_v13, %v818_v9 }
  0x13   :  { %v97_v28 = vld [vmem:[#allocation2] sm:$0xff]  ;;  %v389_v26 = vsel %vm383_vm11, %v380_v18, %v386_v22 }
  0x14   :  { %v98_v29 = vld [vmem:[#allocation2 + $0x8] sm:$0xff]  ;;  %v387_v23 = vmul.f32 0.3, %v381_v19  ;;  %vm384_vm12 = vcmp.ge.f32.partialorder %v381_v19, 0.0 }
  0x15   :  { %v99_v30 = vld [vmem:[#allocation2 + $0x10] sm:$0xff]  ;;  %v103_v31 = vpack.c.bf16 %v98_v29, %v97_v28  ;;  %v100_v33 = vld [vmem:[#allocation2 + $0x2] sm:$0xff] }
  0x16   :  { %v104_v32 = vpack.c.bf16 %v99_v30, %v99_v30  ;;  %v101_v34 = vld [vmem:[#allocation2 + $0xa] sm:$0xff]  ;;  %v102_v36 = vld [vmem:[#allocation2 + $0x12] sm:$0xff]  ;;  %v390_v27 = vsel %vm384_vm12, %v381_v19, %v387_v23  ;;  %392 = vst.msk [vmem:[#allocation2 + $0x1] sm:$0xff] %vm58_vm1, %v389_v26 }
  0x17   :  { %656 = vmatmul.msk.bf16.vlgmr.msra.gmra.mxu1 %vm58_vm1, %v103_v31  ;;  %v162_v35 = vpack.c.bf16 %v101_v34, %v100_v33  ;;  %v163_v37 = vpack.c.bf16 %v102_v36, %v102_v36  ;;  %v933_v29 = vld [vmem:[%s1014_s0 + $0x28] sm:$0xff]  ;;  %393 = vst.msk [vmem:[#allocation2 + $0x9] sm:$0xff] %vm58_vm1, %v390_v27 }
  0x18   :  { %657 = vmatmul.msk.bf16.vlgmr.msra.gmra.mxu3 %vm58_vm1, %v104_v32  ;;  %468 = vmatpush.bf16.msra.mxu1 %v171_v15  ;;  %v379_v30 = vmul.f32 %v933_v29, %v816_v8 }
  0x19   :  { %418 = vmatpush.bf16.msra.mxu3 %v793_v2 }
  0x1a   :  { %v382_v33 = vadd.f32 %v379_v30, %v818_v9 }
  0x1c   :  { %vm385_vm14 = vcmp.ge.f32.partialorder %v382_v33, 0.0 }
  0x1e   :  { %658 = vmatmul.msk.bf16.vlgmr.msrb.gmra.mxu2 %vm58_vm1, %v162_v35  ;;  %v388_v35 = vmul.f32 0.3, %v382_v33 }
  0x1f   :  { %526 = vmatpush.bf16.msrb.mxu2 %v242_v40 }
  0x20   :  { %v391_v40 = vsel %vm385_vm14, %v382_v33, %v388_v35 }
  0x21   :  { %394 = vst.msk [vmem:[#allocation2 + $0x11] sm:$0xff] %vm58_vm1, %v391_v40 }
  0x2e   :  { %659 = vmatmul.msk.bf16.gmra.mxu2 %vm58_vm1, %v163_v37 }
  0x3e   :  { %666 = vmatmul.msk.bf16.vlgmr.msra.gmra.mxu2 %vm58_vm1, %v327_v53  ;;  %v398_v53 = vld [vmem:[#allocation2 + $0x2] sm:$0xff] }
  0x4e   :  { %667 = vmatmul.msk.bf16.gmra.mxu2 %vm58_vm1, %v328_v16 }
  0x8b   :  { %v126_v47 = vpop.f32.mrf.mxu0 }
  0x91   :  { %v131_v38 = vpop.f32.mrf.mxu2 }
  0x93   :  { %v128_v60 = vpop.f32.mrf.mxu0 }
  0x94   :  { %v153_v48 = vpop.f32.mrf.mxu1 }
  0x95   :  { %v154_v49 = vadd.f32 %v153_v48, %v126_v47  ;;  %v403_v47 = vpack.c.bf16 %v390_v27, %v389_v26 }
  0x99   :  { %v133_v43 = vpop.f32.mrf.mxu2 }
  0x9b   :  { %v158_v46 = vpop.f32.mrf.mxu3 }
  0x9c   :  { %v155_v61 = vpop.f32.mrf.mxu1  ;;  %v159_v14 = vadd.f32 %v158_v46, %v131_v38 }
  0x9d   :  { %v156_v0 = vadd.f32 %v155_v61, %v128_v60  ;;  %v400_v60 = vld [vmem:[#allocation2 + $0x12] sm:$0xff] }
  0x9e   :  { %v454_v61 = vpack.c.bf16 %v400_v60, %v400_v60 }
  0xa1   :  { %v182_v54 = vpop.f32.mrf.mxu2 }
  0xa2   :  { %v191_v55 = vadd.f32 %v182_v54, %v154_v49  ;;  %v396_v49 = vld [vmem:[#allocation2 + $0x8] sm:$0xff] }
  0xa3   :  { %v160_v57 = vpop.f32.mrf.mxu3  ;;  %v399_v54 = vld [vmem:[#allocation2 + $0xa] sm:$0xff] }
  0xa4   :  { %v197_v58 = vadd.f32 %v881_v51, %v191_v55  ;;  %v404_v55 = vpack.c.bf16 %v391_v40, %v391_v40  ;;  %v397_v57 = vld [vmem:[#allocation2 + $0x10] sm:$0xff]  ;;  %v593_v40 = vpack.c.bf16 %v914_v11, %v909_v10 }
  0xa6   :  { %v203_v62 = vmul.f32 %v892_v56, %v197_v58  ;;  %v402_v58 = vpack.c.bf16 %v397_v57, %v397_v57 }
  0xa8   :  { %v209_v63 = vadd.f32 %v898_v59, %v203_v62 }
  0xa9   :  { %v184_v1 = vpop.f32.mrf.mxu2 }
  0xaa   :  { %v215_v2 = vmul.f32 0.3, %v209_v63  ;;  %v192_v3 = vadd.f32 %v184_v1, %v156_v0  ;;  %vm212_vm9 = vcmp.ge.f32.partialorder %v209_v63, 0.0 }
  0xac   :  { %v198_v4 = vadd.f32 %v881_v51, %v192_v3  ;;  %v218_v5 = vsel %vm212_vm9, %v209_v63, %v215_v2 }
  0xad   :  { %221 = vst.msk [vmem:[#allocation3 + $0x1] sm:$0xff] %vm64_vm6, %v218_v5 }
  0xae   :  { %v204_v6 = vmul.f32 %v892_v56, %v198_v4  ;;  %v960_v4 = vld [vmem:[%s1020_s6] ss:$0 sm:$0xff]  ;;  %s636_s6 = sshll.u32 %s723_s4, 4  ;;  %s637_s6 = int_to_ptr.vmem [resolvable:$true] %s636_s6 }
  0xb0   :  { %v210_v15 = vadd.f32 %v898_v59, %v204_v6 }
  0xb1   :  { %v187_v17 = vpop.f32.mrf.mxu2 }
  0xb2   :  { %v216_v20 = vmul.f32 0.3, %v210_v15  ;;  %v193_v21 = vadd.f32 %v187_v17, %v159_v14  ;;  %vm213_vm10 = vcmp.ge.f32.partialorder %v210_v15, 0.0 }
  0xb4   :  { %v199_v24 = vadd.f32 %v881_v51, %v193_v21  ;;  %v219_v25 = vsel %vm213_vm10, %v210_v15, %v216_v20  ;;  %v224_v36 = vld [vmem:[#allocation3] sm:$0xff] }
  0xb5   :  { %222 = vst.msk [vmem:[#allocation3 + $0x9] sm:$0xff] %vm64_vm6, %v219_v25  ;;  %v232_v7 = vpack.c.bf16 %v219_v25, %v218_v5 }
  0xb6   :  { %v205_v28 = vmul.f32 %v892_v56, %v199_v24 }
  0xb7   :  { %660 = vmatmul.msk.bf16.vlgmr.msrb.gmra.mxu3 %vm64_vm6, %v232_v7 }
  0xb8   :  { %v211_v31 = vadd.f32 %v898_v59, %v205_v28  ;;  %550 = vmatpush.bf16.msrb.mxu3 %v868_v44 }
  0xb9   :  { %v189_v32 = vpop.f32.mrf.mxu2 }
  0xba   :  { %vm214_vm13 = vcmp.ge.f32.partialorder %v211_v31, 0.0  ;;  %v217_v34 = vmul.f32 0.3, %v211_v31 }
  0xbc   :  { %v225_v37 = vld [vmem:[#allocation3 + $0x8] sm:$0xff]  ;;  %v220_v38 = vsel %vm214_vm13, %v211_v31, %v217_v34 }
  0xbd   :  { %v230_v39 = vpack.c.bf16 %v225_v37, %v224_v36  ;;  %223 = vst.msk [vmem:[#allocation3 + $0x11] sm:$0xff] %vm64_vm6, %v220_v38  ;;  %v227_v8 = vld [vmem:[#allocation3 + $0x2] sm:$0xff]  ;;  %v233_v9 = vpack.c.bf16 %v220_v38, %v220_v38 }
  0xbf   :  { %662 = vmatmul.msk.bf16.vlgmr.msrb.gmra.mxu0 %vm64_vm6, %v230_v39 }
  0xc0   :  { %576 = vmatpush.bf16.msrb.mxu0 %v870_v45  ;;  %v395_v45 = vld [vmem:[#allocation2] sm:$0xff] }
  0xc1   :  { %v401_v50 = vpack.c.bf16 %v396_v49, %v395_v45  ;;  %v350_v62 = vpop.f32.mrf.mxu2 }
  0xc2   :  { %v351_v16 = vadd.f32 %v960_v4, %v350_v62  ;;  %v594_v62 = vpack.c.bf16 %v933_v29, %v933_v29 }
  0xc4   :  { %v228_v41 = vld [vmem:[#allocation3 + $0xa] sm:$0xff]  ;;  %v229_v46 = vld [vmem:[#allocation3 + $0x12] sm:$0xff] }
  0xc5   :  { %v289_v42 = vpack.c.bf16 %v228_v41, %v227_v8  ;;  %v226_v43 = vld [vmem:[#allocation3 + $0x10] sm:$0xff]  ;;  %v290_v48 = vpack.c.bf16 %v229_v46, %v229_v46 }
  0xc6   :  { %v231_v44 = vpack.c.bf16 %v226_v43, %v226_v43 }
  0xc7   :  { %661 = vmatmul.msk.bf16.gmra.mxu3 %vm64_vm6, %v233_v9  ;;  %664 = vmatmul.msk.bf16.vlgmr.msrb.gmra.mxu1 %vm64_vm6, %v289_v42 }
  0xc8   :  { %608 = vmatpush.bf16.msrb.mxu1 %v884_v52  ;;  %v453_v52 = vpack.c.bf16 %v399_v54, %v398_v53 }
  0xc9   :  { %v352_v63 = vpop.f32.mrf.mxu2 }
  0xca   :  { %v353_v24 = vadd.f32 %v960_v4, %v352_v63 }
  0xcf   :  { %663 = vmatmul.msk.bf16.gmra.mxu0 %vm64_vm6, %v231_v44 }
  0xd1   :  { %v355_v0 = vpop.f32.mrf.mxu2 }
  0xd2   :  { %v356_v32 = vadd.f32 %v960_v4, %v355_v0 }
  0xd7   :  { %665 = vmatmul.msk.bf16.gmra.mxu1 %vm64_vm6, %v290_v48  ;;  %671 = vmatmul.msk.bf16.vlgmr.msra.gmra.mxu3 %vm58_vm1, %v403_v47 }
  0xd9   :  { %v357_v3 = vpop.f32.mrf.mxu2 }
  0xdf   :  { %673 = vmatmul.msk.bf16.vlgmr.msra.gmra.mxu0 %vm58_vm1, %v401_v50 }
  0xe7   :  { %672 = vmatmul.msk.bf16.gmra.mxu3 %vm58_vm1, %v404_v55  ;;  %675 = vmatmul.msk.bf16.vlgmr.msra.gmra.mxu1 %vm58_vm1, %v453_v52 }
  0xef   :  { %674 = vmatmul.msk.bf16.gmra.mxu0 %vm58_vm1, %v402_v58 }
  0xf7   :  { %676 = vmatmul.msk.bf16.gmra.mxu1 %vm58_vm1, %v454_v61 }
 0x107   :  { %683 = vmatmul.msk.bf16.vlgmr.msrb.gmra.mxu1 %vm58_vm1, %v593_v40 }
 0x117   :  { %684 = vmatmul.msk.bf16.gmra.mxu1 %vm58_vm1, %v594_v62 }
 0x13a   :  { %v253_v1 = vpop.f32.mrf.mxu3 }
 0x13c   :  { %v280_v2 = vpop.f32.mrf.mxu0 }
 0x13d   :  { %v281_v6 = vadd.f32 %v280_v2, %v253_v1 }
 0x142   :  { %v255_v5 = vpop.f32.mrf.mxu3 }
 0x144   :  { %v282_v13 = vpop.f32.mrf.mxu0  ;;  %v309_v14 = vpop.f32.mrf.mxu1 }
 0x145   :  { %v318_v15 = vadd.f32 %v309_v14, %v281_v6  ;;  %v283_v20 = vadd.f32 %v282_v13, %v255_v5 }
 0x147   :  { %v324_v17 = vadd.f32 %v965_v12, %v318_v15 }
 0x149   :  { %v359_v18 = vadd.f32 %v351_v16, %v324_v17 }
 0x14a   :  { %v258_v19 = vpop.f32.mrf.mxu3 }
 0x14b   :  { %362 = vst.msk [vmem:[#allocation4] sm:$0xff] %vm64_vm6, %v359_v18 }
 0x14c   :  { %v285_v21 = vpop.f32.mrf.mxu0  ;;  %v311_v22 = vpop.f32.mrf.mxu1 }
 0x14d   :  { %v319_v23 = vadd.f32 %v311_v22, %v283_v20  ;;  %v286_v27 = vadd.f32 %v285_v21, %v258_v19 }
 0x14f   :  { %v325_v25 = vadd.f32 %v965_v12, %v319_v23 }
 0x151   :  { %v360_v7 = vadd.f32 %v353_v24, %v325_v25 }
 0x152   :  { %v260_v26 = vpop.f32.mrf.mxu3 }
 0x153   :  { %363 = vst.msk [vmem:[#allocation4 + $0x8] sm:$0xff] %vm64_vm6, %v360_v7 }
 0x154   :  { %v287_v28 = vpop.f32.mrf.mxu0  ;;  %v314_v30 = vpop.f32.mrf.mxu1 }
 0x155   :  { %v320_v31 = vadd.f32 %v314_v30, %v286_v27 }
 0x157   :  { %v326_v33 = vadd.f32 %v965_v12, %v320_v31 }
 0x159   :  { %v361_v34 = vadd.f32 %v356_v32, %v326_v33 }
 0x15a   :  { %v420_v35 = vpop.f32.mrf.mxu3 }
 0x15b   :  { %364 = vst.msk [vmem:[#allocation4 + $0x10] sm:$0xff] %vm64_vm6, %v361_v34 }
 0x15c   :  { %v316_v36 = vpop.f32.mrf.mxu1  ;;  %v444_v37 = vpop.f32.mrf.mxu0 }
 0x15d   :  { %v445_v38 = vadd.f32 %v444_v37, %v420_v35 }
 0x162   :  { %v422_v39 = vpop.f32.mrf.mxu3  ;;  %v365_v8 = vld [vmem:[#allocation4] ss:$3 sm:$0xff]  ;;  %v367_v41 = vld [vmem:[#allocation4 + $0x1] ss:$3 sm:$0xff]  ;;  %v369_v44 = vld [vmem:[#allocation4 + $0x2] ss:$3 sm:$0xff] }
 0x163   :  { %v370_v9 = vmax.f32 %v365_v8, %v367_v41 }
 0x164   :  { %v446_v42 = vpop.f32.mrf.mxu0  ;;  %v470_v43 = vpop.f32.mrf.mxu1 }
 0x165   :  { %v479_v46 = vadd.f32 %v470_v43, %v445_v38  ;;  %v371_v47 = vmax.f32 %v370_v9, %v369_v44  ;;  %v447_v50 = vadd.f32 %v446_v42, %v422_v39 }
 0x167   :  { %v482_v48 = vadd.f32 %v881_v51, %v479_v46  ;;  %372 = vst.msk [vmem:[#allocation5] sm:$0xff] %vm64_vm6, %v371_v47 }
 0x169   :  { %v485_v45 = vmul.f32 %v892_v56, %v482_v48 }
 0x16a   :  { %v425_v49 = vpop.f32.mrf.mxu3 }
 0x16b   :  { %v488_v10 = vadd.f32 %v898_v59, %v485_v45 }
 0x16c   :  { %v449_v11 = vpop.f32.mrf.mxu0  ;;  %v472_v53 = vpop.f32.mrf.mxu1 }
 0x16d   :  { %vm491_vm15 = vcmp.ge.f32.partialorder %v488_v10, 0.0  ;;  %v494_v54 = vmul.f32 0.3, %v488_v10  ;;  %v480_v55 = vadd.f32 %v472_v53, %v447_v50  ;;  %v450_v58 = vadd.f32 %v449_v11, %v425_v49 }
 0x16f   :  { %v497_v52 = vsel %vm491_vm15, %v488_v10, %v494_v54  ;;  %v483_v57 = vadd.f32 %v881_v51, %v480_v55 }
 0x170   :  { %500 = vst.msk [vmem:[#allocation3 + $0x1] sm:$0xff] %vm64_vm6, %v497_v52 }
 0x171   :  { %v486_v60 = vmul.f32 %v892_v56, %v483_v57 }
 0x172   :  { %v427_v61 = vpop.f32.mrf.mxu3 }
 0x173   :  { %v489_v63 = vadd.f32 %v898_v59, %v486_v60 }
 0x174   :  { %v451_v0 = vpop.f32.mrf.mxu0  ;;  %v475_v1 = vpop.f32.mrf.mxu1 }
 0x175   :  { %vm492_vm0 = vcmp.ge.f32.partialorder %v489_v63, 0.0  ;;  %v495_v2 = vmul.f32 0.3, %v489_v63  ;;  %v481_v3 = vadd.f32 %v475_v1, %v450_v58 }
 0x177   :  { %v498_v5 = vsel %vm492_vm0, %v489_v63, %v495_v2  ;;  %v484_v6 = vadd.f32 %v881_v51, %v481_v3  ;;  %v503_v17 = vld [vmem:[#allocation3] sm:$0xff] }
 0x178   :  { %501 = vst.msk [vmem:[#allocation3 + $0x9] sm:$0xff] %vm64_vm6, %v498_v5  ;;  %v511_v13 = vpack.c.bf16 %v498_v5, %v497_v52 }
 0x179   :  { %v487_v14 = vmul.f32 %v892_v56, %v484_v6 }
 0x17a   :  { %677 = vmatmul.msk.bf16.vlgmr.msrb.gmra.mxu2 %vm64_vm6, %v511_v13 }
 0x17b   :  { %v490_v29 = vadd.f32 %v898_v59, %v487_v14 }
 0x17c   :  { %v477_v15 = vpop.f32.mrf.mxu1 }
 0x17d   :  { %vm493_vm2 = vcmp.ge.f32.partialorder %v490_v29, 0.0  ;;  %v496_v16 = vmul.f32 0.3, %v490_v29 }
 0x17f   :  { %v504_v18 = vld [vmem:[#allocation3 + $0x8] sm:$0xff]  ;;  %v499_v19 = vsel %vm493_vm2, %v490_v29, %v496_v16 }
 0x180   :  { %v509_v20 = vpack.c.bf16 %v504_v18, %v503_v17  ;;  %502 = vst.msk [vmem:[#allocation3 + $0x11] sm:$0xff] %vm64_vm6, %v499_v19  ;;  %v506_v51 = vld [vmem:[#allocation3 + $0x2] sm:$0xff]  ;;  %v512_v22 = vpack.c.bf16 %v499_v19, %v499_v19 }
 0x182   :  { %679 = vmatmul.msk.bf16.vlgmr.msrb.gmra.mxu3 %vm64_vm6, %v509_v20 }
 0x184   :  { %v610_v7 = vpop.f32.mrf.mxu1 }
 0x185   :  { %v611_v35 = vadd.f32 %v960_v4, %v610_v7 }
 0x187   :  { %v507_v21 = vld [vmem:[#allocation3 + $0xa] sm:$0xff]  ;;  %v508_v24 = vld [vmem:[#allocation3 + $0x12] sm:$0xff] }
 0x188   :  { %v561_v23 = vpack.c.bf16 %v507_v21, %v506_v51  ;;  %v505_v56 = vld [vmem:[#allocation3 + $0x10] sm:$0xff]  ;;  %v562_v25 = vpack.c.bf16 %v508_v24, %v508_v24 }
 0x189   :  { %v510_v59 = vpack.c.bf16 %v505_v56, %v505_v56 }
 0x18a   :  { %678 = vmatmul.msk.bf16.gmra.mxu2 %vm64_vm6, %v512_v22  ;;  %681 = vmatmul.msk.bf16.vlgmr.msrb.gmra.mxu0 %vm64_vm6, %v561_v23 }
 0x18c   :  { %v612_v26 = vpop.f32.mrf.mxu1 }
 0x18d   :  { %v613_v42 = vadd.f32 %v960_v4, %v612_v26 }
 0x192   :  { %680 = vmatmul.msk.bf16.gmra.mxu3 %vm64_vm6, %v510_v59 }
 0x194   :  { %v615_v27 = vpop.f32.mrf.mxu1 }
 0x195   :  { %v616_v49 = vadd.f32 %v960_v4, %v615_v27 }
 0x19a   :  { %682 = vmatmul.msk.bf16.gmra.mxu0 %vm64_vm6, %v562_v25 }
 0x19c   :  { %v617_v28 = vpop.f32.mrf.mxu1 }
 0x1fd   :  { %v528_v30 = vpop.f32.mrf.mxu2 }
 0x205   :  { %v530_v31 = vpop.f32.mrf.mxu2  ;;  %v552_v32 = vpop.f32.mrf.mxu3 }
 0x206   :  { %v553_v33 = vadd.f32 %v552_v32, %v528_v30 }
 0x207   :  { %v578_v34 = vpop.f32.mrf.mxu0 }
 0x208   :  { %v587_v36 = vadd.f32 %v578_v34, %v553_v33 }
 0x20a   :  { %v590_v37 = vadd.f32 %v965_v12, %v587_v36 }
 0x20c   :  { %v619_v38 = vadd.f32 %v611_v35, %v590_v37 }
 0x20d   :  { %v533_v39 = vpop.f32.mrf.mxu2  ;;  %v554_v40 = vpop.f32.mrf.mxu3 }
 0x20e   :  { %v555_v8 = vadd.f32 %v554_v40, %v530_v31  ;;  %622 = vst.msk [vmem:[#allocation4] sm:$0xff] %vm64_vm6, %v619_v38 }
 0x20f   :  { %v580_v41 = vpop.f32.mrf.mxu0 }
 0x210   :  { %v588_v9 = vadd.f32 %v580_v41, %v555_v8 }
 0x212   :  { %v591_v43 = vadd.f32 %v965_v12, %v588_v9 }
 0x214   :  { %v620_v44 = vadd.f32 %v613_v42, %v591_v43 }
 0x215   :  { %v535_v46 = vpop.f32.mrf.mxu2  ;;  %v557_v47 = vpop.f32.mrf.mxu3 }
 0x216   :  { %v558_v48 = vadd.f32 %v557_v47, %v533_v39  ;;  %623 = vst.msk [vmem:[#allocation4 + $0x8] sm:$0xff] %vm64_vm6, %v620_v44 }
 0x217   :  { %v583_v45 = vpop.f32.mrf.mxu0 }
 0x218   :  { %v589_v50 = vadd.f32 %v583_v45, %v558_v48 }
 0x21a   :  { %v592_v10 = vadd.f32 %v965_v12, %v589_v50 }
 0x21c   :  { %v621_v11 = vadd.f32 %v616_v49, %v592_v10 }
 0x21d   :  { %v559_v53 = vpop.f32.mrf.mxu3 }
 0x21e   :  { %624 = vst.msk [vmem:[#allocation4 + $0x10] sm:$0xff] %vm64_vm6, %v621_v11 }
 0x21f   :  { %v585_v54 = vpop.f32.mrf.mxu0 }
 0x225   :  { %v625_v55 = vld [vmem:[#allocation4] ss:$3 sm:$0xff]  ;;  %v626_v52 = vld [vmem:[#allocation4 + $0x1] ss:$3 sm:$0xff]  ;;  %v627_v58 = vld [vmem:[#allocation4 + $0x2] ss:$3 sm:$0xff] }
 0x226   :  { %v628_v57 = vmax.f32 %v625_v55, %v626_v52 }
 0x228   :  { %v629_v4 = vmax.f32 %v628_v57, %v627_v58 }
 0x22a   :  { %631 = vst.msk [vmem:[#allocation5 + $0x8] sm:$0xff] %vm64_vm6, %v629_v4 }
 0x22b   :  { %644 = dma.vmem_to_hbm [thread:$0]  %s637_s6, 256, %s639_s29, [#allocation6], %s724_s30, %s724_s30, %s725_s1  }
 0x22c   :  { %720 = dma.done.wait [#allocation6], 256  }
 0x22d   :  { %721 = vsyncadd [#allocation6], 4294967040 }
 0x22e   :  { %649 = vsyncpa [#allocation6], 1 }

</bundles_post_ra>
